<compile_context>
chip_gen: v7x
topology: tpu7x:2x2x1
jax: 0.10.0
libtpu: 0.0.40
codegen_flags: <defaults>
</compile_context>

<pallas_src>
from collections import namedtuple
from functools import partial

import numpy as np
import jax
import jax.numpy as jnp
from jax.experimental import pallas as pl
from jax.experimental.pallas import tpu as pltpu

# Constants from the PyTorch module
WORD_DIM = 20
CHAR_DIM = 20
TAG_DIM = 20
EMB_DIM = WORD_DIM + CHAR_DIM + TAG_DIM          # 60
INPUT_DIM = EMB_DIM * (3 + 3)                    # 360
HIDDEN_SIZE = 200

# Padded (MXU / lane friendly) shapes
INPUT_PAD = 384                                  # 360 -> 3 * 128
HIDDEN_PAD = 256                                 # 200 -> 2 * 128
OUT_PAD = 128                                    # 1 + 2*dep_count -> 128

# Only the structural parse state lives on the host; embeddings are a shared
# stacked device array created once per batch of sentences.
SyntaxState = namedtuple("SyntaxState", "stack buffer")


def _mlp_kernel(x_ref, w1_ref, b1_ref, w2_ref, b2_ref, out_ref):
    # X [TB, 384] bf16 -> relu(X @ W1 + b1) f32 -> (bf16) @ W2 + b2 -> [TB, 128]
    x = x_ref[...]
    h = jnp.dot(x, w1_ref[...], preferred_element_type=jnp.float32)
    h = jnp.maximum(h + b1_ref[...], 0.0)
    # TODO(synk): dropout(p=0.5, training=True) path not implemented; forward
    # is evaluated with training=False (identity), matching the default.
    out = jnp.dot(h.astype(jnp.bfloat16), w2_ref[...],
                  preferred_element_type=jnp.float32) + b2_ref[...]
    out_ref[...] = out


def parser_mlp(x, w1, b1, w2, b2, tile_b):
    """Pallas call: [Bp, INPUT_PAD] (bf16) -> [Bp, OUT_PAD] (f32)."""
    Bp, k = x.shape
    out_dim = w2.shape[1]
    n_tiles = Bp // tile_b
    return pl.pallas_call(
        _mlp_kernel,
        out_shape=jax.ShapeDtypeStruct((Bp, out_dim), jnp.float32),
        grid=(n_tiles,),
        in_specs=[
            pl.BlockSpec((tile_b, k), lambda i: (i, 0)),
            pl.BlockSpec(w1.shape, lambda i: (0, 0)),   # weights resident
            pl.BlockSpec(b1.shape, lambda i: (0, 0)),
            pl.BlockSpec(w2.shape, lambda i: (0, 0)),
            pl.BlockSpec(b2.shape, lambda i: (0, 0)),
        ],
        out_specs=pl.BlockSpec((tile_b, out_dim), lambda i: (i, 0)),
        compiler_params=pltpu.CompilerParams(
            dimension_semantics=("parallel",)),   # 2x on v7x (2 TCs)
    )(x, w1, b1, w2, b2)


def _round_up(x, m):
    return (x + m - 1) // m * m


@partial(jax.jit, static_argnames=("out_dim",))
def _device_forward(emb, idx, w1, b1, w2, b2, *, out_dim):
    """Single-dispatch device path: gather -> pad -> Pallas MLP -> slice."""
    B = emb.shape[0]
    # Vectorized gather of the 6 feature rows per state: [B, 6, E] -> [B, 360]
    x = jnp.take_along_axis(emb, idx[:, :, None], axis=1).reshape(B, -1)
    # Pad feature dim 360 -> 384 (zeros; matching w1 rows are zero).
    x = jnp.pad(x, ((0, 0), (0, INPUT_PAD - x.shape[1])))
    # Pad batch to a tile-friendly size; tile only over the batch axis.
    tile_b = 256 if B > 256 else max(16, _round_up(B, 16))
    Bp = _round_up(B, tile_b)
    if Bp != B:
        x = jnp.pad(x, ((0, Bp - B), (0, 0)))
    x = x.astype(jnp.bfloat16)
    out = parser_mlp(x, w1, b1, w2, b2, tile_b)
    return out[:B, :out_dim]


def get_legal_actions(states, dep_count):
    """Host-side mask identical to ArcStandardParser.get_legal_actions."""
    legal = np.ones([len(states), 1 + dep_count * 2], dtype=np.float32)
    for i, s in enumerate(states):
        if len(s.buffer) > 3:
            legal[i, 0] = 0
        if len(s.stack) <= 3:
            legal[i, 1:dep_count + 1] = 0
        if len(s.stack) <= 4:
            legal[i, dep_count + 1:] = 0
    return jnp.asarray(legal)


def forward(embeddings, states, params, dep_count):
    """Mirrors ArcStandardParser.forward(states, training=False).

    embeddings: [B, L, EMB_DIM] stacked once at state-creation time.
    states: list of SyntaxState(stack, buffer) (host Python structure).
    """
    idx = np.concatenate(
        [np.array([s.stack[-3:] for s in states], dtype=np.int32),
         np.array([s.buffer[:3] for s in states], dtype=np.int32)],
        axis=1)                                          # [B, 6]
    out = _device_forward(embeddings, jnp.asarray(idx),
                          params["w1"], params["b1"],
                          params["w2"], params["b2"],
                          out_dim=1 + 2 * dep_count)
    return out, get_legal_actions(states, dep_count)


def make_params(key, dep_count):
    """Returns (padded bf16/f32 params for the kernel, raw f32 params for ref)."""
    out_dim = 1 + 2 * dep_count
    k1, k2, k3, k4 = jax.random.split(key, 4)
    # nn.Linear default init: U(-1/sqrt(fan_in), 1/sqrt(fan_in))
    lim1 = 1.0 / np.sqrt(INPUT_DIM)
    lim2 = 1.0 / np.sqrt(HIDDEN_SIZE)
    w1 = jax.random.uniform(k1, (INPUT_DIM, HIDDEN_SIZE), jnp.float32, -lim1, lim1)
    b1 = jax.random.uniform(k2, (HIDDEN_SIZE,), jnp.float32, -lim1, lim1)
    w2 = jax.random.uniform(k3, (HIDDEN_SIZE, out_dim), jnp.float32, -lim2, lim2)
    b2 = jax.random.uniform(k4, (out_dim,), jnp.float32, -lim2, lim2)
    raw = {"w1": w1, "b1": b1, "w2": w2, "b2": b2}
    padded = {
        "w1": jnp.zeros((INPUT_PAD, HIDDEN_PAD), jnp.bfloat16)
              .at[:INPUT_DIM, :HIDDEN_SIZE].set(w1.astype(jnp.bfloat16)),
        "b1": jnp.zeros((1, HIDDEN_PAD), jnp.float32)
              .at[:, :HIDDEN_SIZE].set(b1),
        "w2": jnp.zeros((HIDDEN_PAD, OUT_PAD), jnp.bfloat16)
              .at[:HIDDEN_SIZE, :out_dim].set(w2.astype(jnp.bfloat16)),
        "b2": jnp.zeros((1, OUT_PAD), jnp.float32)
              .at[:, :out_dim].set(b2),
    }
    return padded, raw


def make_initial_states(key, batch, sent_len):
    """Synthetic analogue of create_initial_states.

    Embeddings for the padded sentence ([ROOT] + words + 3*[EMPTY]) are
    precomputed and stacked ONCE into a [B, L, EMB_DIM] device array.
    """
    L = 1 + sent_len + 3
    embeddings = jax.random.normal(key, (batch, L, EMB_DIM), jnp.float32) \
        * np.sqrt(1.0 / INPUT_DIM)
    word_empty_index = L - 1
    states = [
        SyntaxState(stack=[word_empty_index, word_empty_index, 0],
                    buffer=[i + 1 for i in range(L - 1)])
        for _ in range(batch)
    ]
    return embeddings, states


def _reference_forward(embeddings, states, raw_params, dep_count):
    """Pure-JAX f32 reference mirroring the PyTorch math (training=False)."""
    idx = np.concatenate(
        [np.array([s.stack[-3:] for s in states], dtype=np.int32),
         np.array([s.buffer[:3] for s in states], dtype=np.int32)],
        axis=1)
    B = embeddings.shape[0]
    x = jnp.take_along_axis(
        embeddings, jnp.asarray(idx)[:, :, None], axis=1).reshape(B, -1)
    h = jnp.maximum(x @ raw_params["w1"] + raw_params["b1"], 0.0)
    return h @ raw_params["w2"] + raw_params["b2"]


if __name__ == "__main__":
    key = jax.random.PRNGKey(0)
    k_params, k_states, k_states2 = jax.random.split(key, 3)

    dep_count = 5                      # dependency_relations_count
    batch = 4
    sent_len = 8

    params, raw_params = make_params(k_params, dep_count)
    embeddings, states = make_initial_states(k_states, batch, sent_len)

    out, legal = forward(embeddings, states, params, dep_count)
    out = jax.block_until_ready(out)
    legal = jax.block_until_ready(legal)

    assert out.shape == (batch, 1 + 2 * dep_count)
    assert legal.shape == (batch, 1 + 2 * dep_count)
    assert jnp.all(jnp.isfinite(out))

    # Numerical parity with the f32 reference (bf16 MXU operands, f32 accum).
    ref = _reference_forward(embeddings, states, raw_params, dep_count)
    assert jnp.allclose(out, ref, atol=2e-2, rtol=2e-2), \
        float(jnp.max(jnp.abs(out - ref)))

    # Larger batch exercises the multi-tile "parallel" grid path.
    embeddings2, states2 = make_initial_states(k_states2, 300, 6)
    out2, legal2 = forward(embeddings2, states2, params, dep_count)
    out2 = jax.block_until_ready(out2)
    assert out2.shape == (300, 1 + 2 * dep_count)
    assert jnp.all(jnp.isfinite(out2))

    print("KERNEL_OK")
</pallas_src>

<mosaic_0001>
module attributes {stable_mosaic.version = 11 : i64} {
  func.func @_mlp_kernel(%arg0: i32, %arg1: memref<16x384xbf16, #tpu.memory_space<vmem>>, %arg2: memref<384x256xbf16, #tpu.memory_space<vmem>>, %arg3: memref<1x256xf32, #tpu.memory_space<vmem>>, %arg4: memref<256x128xbf16, #tpu.memory_space<vmem>>, %arg5: memref<1x128xf32, #tpu.memory_space<vmem>>, %arg6: memref<16x128xf32, #tpu.memory_space<vmem>>) attributes {dimension_semantics = [#tpu.dimension_semantics<parallel>], iteration_bounds = array<i64: 1>, scalar_prefetch = 0 : i64, scratch_operands = 0 : i64, tpu.core_type = #tpu.core_type<tc>, window_params = [{transform_indices = @transform_0, window_bounds = array<i64: 16, 384>}, {pipeline_mode = #tpu.pipeline_mode<synchronous>, transform_indices = @transform_1, window_bounds = array<i64: 384, 256>}, {pipeline_mode = #tpu.pipeline_mode<synchronous>, transform_indices = @transform_2, window_bounds = array<i64: 1, 256>}, {pipeline_mode = #tpu.pipeline_mode<synchronous>, transform_indices = @transform_3, window_bounds = array<i64: 256, 128>}, {pipeline_mode = #tpu.pipeline_mode<synchronous>, transform_indices = @transform_4, window_bounds = array<i64: 1, 128>}, {transform_indices = @transform_5, window_bounds = array<i64: 16, 128>}]} {
    %c0 = arith.constant 0 : index
    %c0_0 = arith.constant 0 : index
    %0 = vector.load %arg1[%c0, %c0_0] : memref<16x384xbf16, #tpu.memory_space<vmem>>, vector<16x384xbf16>
    %c0_1 = arith.constant 0 : index
    %c0_2 = arith.constant 0 : index
    %1 = vector.load %arg2[%c0_1, %c0_2] : memref<384x256xbf16, #tpu.memory_space<vmem>>, vector<384x256xbf16>
    %cst = arith.constant dense<0.000000e+00> : vector<16x256xf32>
    %2 = tpu.matmul %0, %1, %cst {dimension_numbers = #tpu.dot_dimension_numbers<[1], [0], [0], [1], [0, 0, 1, 1], [], []>} : vector<16x384xbf16>, vector<384x256xbf16>, vector<16x256xf32> -> vector<16x256xf32>
    %c0_3 = arith.constant 0 : index
    %c0_4 = arith.constant 0 : index
    %3 = vector.load %arg3[%c0_3, %c0_4] : memref<1x256xf32, #tpu.memory_space<vmem>>, vector<1x256xf32>
    %4 = vector.broadcast %3 : vector<1x256xf32> to vector<16x256xf32>
    %5 = arith.addf %2, %4 : vector<16x256xf32>
    %cst_5 = arith.constant 0.000000e+00 : f32
    %6 = vector.broadcast %cst_5 : f32 to vector<16x256xf32>
    %7 = arith.maximumf %5, %6 : vector<16x256xf32>
    %8 = arith.truncf %7 : vector<16x256xf32> to vector<16x256xbf16>
    %c0_6 = arith.constant 0 : index
    %c0_7 = arith.constant 0 : index
    %9 = vector.load %arg4[%c0_6, %c0_7] : memref<256x128xbf16, #tpu.memory_space<vmem>>, vector<256x128xbf16>
    %cst_8 = arith.constant dense<0.000000e+00> : vector<16x128xf32>
    %10 = tpu.matmul %8, %9, %cst_8 {dimension_numbers = #tpu.dot_dimension_numbers<[1], [0], [0], [1], [0, 0, 1, 1], [], []>} : vector<16x256xbf16>, vector<256x128xbf16>, vector<16x128xf32> -> vector<16x128xf32>
    %c0_9 = arith.constant 0 : index
    %c0_10 = arith.constant 0 : index
    %11 = vector.load %arg5[%c0_9, %c0_10] : memref<1x128xf32, #tpu.memory_space<vmem>>, vector<1x128xf32>
    %12 = vector.broadcast %11 : vector<1x128xf32> to vector<16x128xf32>
    %13 = arith.addf %10, %12 : vector<16x128xf32>
    %c0_11 = arith.constant 0 : index
    %c0_12 = arith.constant 0 : index
    %14 = vector.load %arg6[%c0_11, %c0_12] : memref<16x128xf32, #tpu.memory_space<vmem>>, vector<16x128xf32>
    tpu.vector_store %arg6[%c0_11, %c0_12], %13 {strides = array<i32>} : memref<16x128xf32, #tpu.memory_space<vmem>>, vector<16x128xf32>,
    return
  }
  func.func @transform_0(%arg0: i32) -> (i32, i32) {
    %c0_i32 = arith.constant 0 : i32
    %c0_i32_0 = arith.constant 0 : i32
    return %arg0, %c0_i32 : i32, i32
  }
  func.func @transform_1(%arg0: i32) -> (i32, i32) {
    %c0_i32 = arith.constant 0 : i32
    %c0_i32_0 = arith.constant 0 : i32
    %c0_i32_1 = arith.constant 0 : i32
    return %c0_i32, %c0_i32_0 : i32, i32
  }
  func.func @transform_2(%arg0: i32) -> (i32, i32) {
    %c0_i32 = arith.constant 0 : i32
    %c0_i32_0 = arith.constant 0 : i32
    %c0_i32_1 = arith.constant 0 : i32
    return %c0_i32, %c0_i32_0 : i32, i32
  }
  func.func @transform_3(%arg0: i32) -> (i32, i32) {
    %c0_i32 = arith.constant 0 : i32
    %c0_i32_0 = arith.constant 0 : i32
    %c0_i32_1 = arith.constant 0 : i32
    return %c0_i32, %c0_i32_0 : i32, i32
  }
  func.func @transform_4(%arg0: i32) -> (i32, i32) {
    %c0_i32 = arith.constant 0 : i32
    %c0_i32_0 = arith.constant 0 : i32
    %c0_i32_1 = arith.constant 0 : i32
    return %c0_i32, %c0_i32_0 : i32, i32
  }
  func.func @transform_5(%arg0: i32) -> (i32, i32) {
    %c0_i32 = arith.constant 0 : i32
    %c0_i32_0 = arith.constant 0 : i32
    return %arg0, %c0_i32 : i32, i32
  }
}

</mosaic_0001>

<bundles_post_ra>
// kernel: _device_forward.1
= control target key start
LH: loop header
LB: loop body
LE: loop exit
PB: predicated region body
PF: predicated region fallthrough
CT: control target
= control target key end

     0   :  { %10 = vsyncpa [#allocation3], 0  ;;  %s848_s18 = smov [#allocation2]   ;;  %s963_s0 = inlined_call_operand.vmem [shape: bf16[16,384], index: 0, kind: input, shape index: {}]   ;;  %s964_s1 = inlined_call_operand.hbm [shape: bf16[384,256], index: 1, kind: input, shape index: {}]   ;;  %s965_s2 = inlined_call_operand.vmem [shape: f32[1,256], index: 2, kind: input, shape index: {}]   ;;  %s966_s3 = inlined_call_operand.vmem [shape: bf16[256,128], index: 3, kind: input, shape index: {}]   ;;  %s967_s4 = inlined_call_operand.vmem [shape: f32[1,128], index: 4, kind: input, shape index: {}]   ;;  %s968_s5 = inlined_call_operand.vmem [shape: f32[16,128], index: 5, kind: output, shape index: {}]  }
   0x1   :  { %s18_s19 = sshll.u32 %s848_s18, 4  ;;  %s824_s22 = scalar_lea.hbm %s964_s1, 6144  ;;  %s19_s19 = int_to_ptr.vmem [resolvable:$true] %s18_s19 }
   0x2   :  { %p825_p0 = scmp.ne.s32.totalorder %s964_s1, %s824_s22  ;;  %p828_p1 = scmp.lt.u32.totalorder %s824_s22, %s964_s1 }
   0x4   :  { %p830_p2 = pnand %p828_p1, %p825_p0 }
   0x6   :  { %833 = shalt.err (!%p830_p2)
}
   0x7   :  { %s834_s27 = scalar_lea.vmem %s19_s19, 6144  ;;  %p839_p4 = scmp.lt.s32.totalorder %s19_s19, %s19_s19 }
   0x8   :  { %p835_p3 = scmp.ne.s32.totalorder %s19_s19, %s834_s27  ;;  %p840_p5 = scmp.lt.s32.totalorder %s834_s27, %s834_s27 }
   0xa   :  { %p841_p6 = por %p840_p5, %p839_p4 }
   0xc   :  { %p842_p7 = pnand %p841_p6, %p835_p3 }
   0xe   :  { %845 = shalt.err (!%p842_p7)
}
   0xf   :  { %s849_s28 = smov 128   ;;  %s850_s29 = smov 8  }
  0x10   :  { %24 = dma.hbm_to_vmem [thread:$0]  %s964_s1, 6144, %s19_s19, [#allocation3], %s849_s28, %s849_s28, %s850_s29  }
  0x11   :  { %846 = dma.done.wait [#allocation3], 6144  }
  0x12   :  { %847 = vsyncadd [#allocation3], 4294961152  ;;  %v851_v0 = vmov 0   ;;  %v732_v1 = vld [vmem:[#allocation2 + $0x4] ss:$8 sps:$4 sm:$0xff]   ;;  %v812_v49 = vld [vmem:[%s966_s3 + $0x50] sm:$0xff]  }
  0x13   :  { %430 = vmatprep.mubr.bf16.mxu1 %v851_v0  ;;  %v734_v2 = vld [vmem:[#allocation2] ss:$8 sps:$4 sm:$0xff]   ;;  %355 = vmatprep.subr.bf16.mxu0 %v732_v1  ;;  %v735_v3 = vld [vmem:[#allocation2 + $0x14] ss:$8 sps:$4 sm:$0xff]   ;;  %v737_v4 = vld [vmem:[#allocation2 + $0x10] ss:$8 sps:$4 sm:$0xff]  }
  0x14   :  { %356 = vmatpush1.bf16.msra.mxu0 %v734_v2  ;;  %v738_v5 = vld [vmem:[#allocation2 + $0x24] ss:$8 sps:$4 sm:$0xff]   ;;  %v740_v6 = vld [vmem:[#allocation2 + $0x20] ss:$8 sps:$4 sm:$0xff]   ;;  %v741_v7 = vld [vmem:[#allocation2 + $0x34] ss:$8 sps:$4 sm:$0xff]  }
  0x15   :  { %357 = vmatprep.subr.bf16.mxu0 %v735_v3  ;;  %v743_v8 = vld [vmem:[#allocation2 + $0x30] ss:$8 sps:$4 sm:$0xff]   ;;  %v756_v9 = vld [vmem:[#allocation2 + $0x104] ss:$8 sps:$4 sm:$0xff]   ;;  %v760_v11 = vld [vmem:[#allocation2 + $0x100] ss:$8 sps:$4 sm:$0xff]  }
  0x16   :  { %v744_v10 = vld [vmem:[#allocation2 + $0x44] ss:$8 sps:$4 sm:$0xff]   ;;  %398 = vmatprep.subr.bf16.mxu1 %v756_v9  ;;  %v762_v12 = vld [vmem:[#allocation2 + $0x114] ss:$8 sps:$4 sm:$0xff]   ;;  %v746_v13 = vld [vmem:[#allocation2 + $0x40] ss:$8 sps:$4 sm:$0xff]  }
  0x17   :  { %399 = vmatpush1.bf16.msra.mxu1 %v760_v11  ;;  %v747_v14 = vld [vmem:[#allocation2 + $0x54] ss:$8 sps:$4 sm:$0xff]   ;;  %v766_v15 = vld [vmem:[#allocation2 + $0x110] ss:$8 sps:$4 sm:$0xff]   ;;  %v768_v16 = vld [vmem:[#allocation2 + $0x124] ss:$8 sps:$4 sm:$0xff]  }
  0x18   :  { %358 = vmatpush1.bf16.msra.mxu0 %v737_v4  ;;  %400 = vmatprep.subr.bf16.mxu1 %v762_v12  ;;  %v749_v17 = vld [vmem:[#allocation2 + $0x50] ss:$8 sps:$4 sm:$0xff]   ;;  %v772_v18 = vld [vmem:[#allocation2 + $0x120] ss:$8 sps:$4 sm:$0xff]   ;;  %v774_v19 = vld [vmem:[#allocation2 + $0x134] ss:$8 sps:$4 sm:$0xff]  }
  0x19   :  { %359 = vmatprep.subr.bf16.mxu0 %v738_v5  ;;  %v750_v20 = vld [vmem:[#allocation2 + $0x64] ss:$8 sps:$4 sm:$0xff]   ;;  %v778_v21 = vld [vmem:[#allocation2 + $0x130] ss:$8 sps:$4 sm:$0xff]   ;;  %v752_v22 = vld [vmem:[#allocation2 + $0x60] ss:$8 sps:$4 sm:$0xff]  }
  0x1a   :  { %v780_v23 = vld [vmem:[#allocation2 + $0x144] ss:$8 sps:$4 sm:$0xff]   ;;  %v753_v24 = vld [vmem:[#allocation2 + $0x74] ss:$8 sps:$4 sm:$0xff]   ;;  %v755_v25 = vld [vmem:[#allocation2 + $0x70] ss:$8 sps:$4 sm:$0xff]  }
  0x1b   :  { %401 = vmatpush1.bf16.msra.mxu1 %v766_v15  ;;  %v784_v26 = vld [vmem:[#allocation2 + $0x140] ss:$8 sps:$4 sm:$0xff]   ;;  %v786_v27 = vld [vmem:[#allocation2 + $0x154] ss:$8 sps:$4 sm:$0xff]   ;;  %v758_v28 = vld [vmem:[#allocation2 + $0x84] ss:$8 sps:$4 sm:$0xff]  }
  0x1c   :  { %360 = vmatpush1.bf16.msra.mxu0 %v740_v6  ;;  %402 = vmatprep.subr.bf16.mxu1 %v768_v16  ;;  %v790_v29 = vld [vmem:[#allocation2 + $0x150] ss:$8 sps:$4 sm:$0xff]   ;;  %v761_v30 = vld [vmem:[#allocation2 + $0x80] ss:$8 sps:$4 sm:$0xff]   ;;  %v792_v31 = vld [vmem:[#allocation2 + $0x164] ss:$8 sps:$4 sm:$0xff]  }
  0x1d   :  { %361 = vmatprep.subr.bf16.mxu0 %v741_v7  ;;  %v764_v32 = vld [vmem:[#allocation2 + $0x94] ss:$8 sps:$4 sm:$0xff]   ;;  %v767_v33 = vld [vmem:[#allocation2 + $0x90] ss:$8 sps:$4 sm:$0xff]   ;;  %v796_v35 = vld [vmem:[#allocation2 + $0x160] ss:$8 sps:$4 sm:$0xff]  }
  0x1e   :  { %v806_v34 = vld [vmem:[%s963_s0 + $0x4] ss:$12 sps:$4 sm:$0xff]   ;;  %v798_v36 = vld [vmem:[#allocation2 + $0x174] ss:$8 sps:$4 sm:$0xff]   ;;  %v773_v38 = vld [vmem:[#allocation2 + $0xa0] ss:$8 sps:$4 sm:$0xff]  }
  0x1f   :  { %403 = vmatpush1.bf16.msra.mxu1 %v772_v18  ;;  %v770_v37 = vld [vmem:[#allocation2 + $0xa4] ss:$8 sps:$4 sm:$0xff]   ;;  %387 = vmatprep.mubr.bf16.mxu0 %v806_v34  ;;  %v802_v39 = vld [vmem:[#allocation2 + $0x170] ss:$8 sps:$4 sm:$0xff]   ;;  %v776_v41 = vld [vmem:[#allocation2 + $0xb4] ss:$8 sps:$4 sm:$0xff]  }
  0x20   :  { %362 = vmatpush1.bf16.msra.mxu0 %v743_v8  ;;  %404 = vmatprep.subr.bf16.mxu1 %v774_v19  ;;  %v808_v40 = vld [vmem:[%s966_s3 + $0x40] sm:$0xff]   ;;  %v779_v42 = vld [vmem:[#allocation2 + $0xb0] ss:$8 sps:$4 sm:$0xff]   ;;  %v807_v43 = vld [vmem:[%s963_s0 + $0x8] ss:$12 sps:$4 sm:$0xff]   ;;  %v89_v8 = vlaneseq }
  0x21   :  { %363 = vmatprep.subr.bf16.mxu0 %v744_v10  ;;  %v782_v44 = vld [vmem:[#allocation2 + $0xc4] ss:$8 sps:$4 sm:$0xff]   ;;  %v785_v48 = vld [vmem:[#allocation2 + $0xc0] ss:$8 sps:$4 sm:$0xff]   ;;  %v788_v50 = vld [vmem:[#allocation2 + $0xd4] ss:$8 sps:$4 sm:$0xff]  }
  0x22   :  { %v809_v45 = vld [vmem:[%s966_s3] sm:$0xff]   ;;  %v810_v46 = vld [vmem:[%s966_s3 + $0x48] sm:$0xff]   ;;  %v813_v51 = vld [vmem:[%s966_s3 + $0x10] sm:$0xff]   ;;  %v90_v9 = vshrl.u32 %v89_v8, 7 }
  0x23   :  { %405 = vmatpush1.bf16.msra.mxu1 %v778_v21  ;;  %v811_v47 = vld [vmem:[%s966_s3 + $0x8] sm:$0xff]   ;;  %v791_v52 = vld [vmem:[#allocation2 + $0xd0] ss:$8 sps:$4 sm:$0xff]   ;;  %v816_v57 = vld [vmem:[%s966_s3 + $0x60] sm:$0xff]  }
  0x24   :  { %364 = vmatpush1.bf16.msra.mxu0 %v746_v13  ;;  %406 = vmatprep.subr.bf16.mxu1 %v780_v23  ;;  %v814_v53 = vld [vmem:[%s966_s3 + $0x58] sm:$0xff]   ;;  %v794_v54 = vld [vmem:[#allocation2 + $0xe4] ss:$8 sps:$4 sm:$0xff]   ;;  %v797_v56 = vld [vmem:[#allocation2 + $0xe0] ss:$8 sps:$4 sm:$0xff]   ;;  %v91_v10 = vsub.s32 0, %v90_v9 }
  0x25   :  { %365 = vmatprep.subr.bf16.mxu0 %v747_v14  ;;  %v815_v55 = vld [vmem:[%s966_s3 + $0x18] sm:$0xff]   ;;  %v817_v59 = vld [vmem:[%s966_s3 + $0x20] sm:$0xff]   ;;  %v818_v62 = vld [vmem:[%s966_s3 + $0x68] sm:$0xff]   ;;  %v95_v12 = vsub.s32 1, %v90_v9 }
  0x26   :  { %v800_v58 = vld [vmem:[#allocation2 + $0xf4] ss:$8 sps:$4 sm:$0xff]   ;;  %v803_v60 = vld [vmem:[#allocation2 + $0xf0] ss:$8 sps:$4 sm:$0xff]   ;;  %v804_v61 = vld [vmem:[%s963_s0] ss:$12 sps:$4 sm:$0xff]  }
  0x27   :  { %407 = vmatpush1.bf16.msra.mxu1 %v784_v26  ;;  %v819_v63 = vld [vmem:[%s966_s3 + $0x28] sm:$0xff]   ;;  %v820_v0 = vld [vmem:[%s966_s3 + $0x70] sm:$0xff]   ;;  %v822_v2 = vld [vmem:[%s966_s3 + $0x78] sm:$0xff]  }
  0x28   :  { %366 = vmatpush1.bf16.msra.mxu0 %v749_v17  ;;  %408 = vmatprep.subr.bf16.mxu1 %v786_v27  ;;  %v821_v1 = vld [vmem:[%s966_s3 + $0x30] sm:$0xff]   ;;  %v823_v3 = vld [vmem:[%s966_s3 + $0x38] sm:$0xff]   ;;  %v87_v11 = vld [vmem:[%s965_s2] sm:$0x3] }
  0x29   :  { %367 = vmatprep.subr.bf16.mxu0 %v750_v20  ;;  %v92_v13 = vrot.slane %v87_v11, %v91_v10  ;;  %v96_v14 = vrot.slane %v87_v11, %v95_v12  ;;  %v681_v34 = vld [vmem:[%s967_s4] ss:$0 sm:$0xff] }
  0x2b   :  { %409 = vmatpush1.bf16.msra.mxu1 %v790_v29 }
  0x2c   :  { %368 = vmatpush1.bf16.msra.mxu0 %v752_v22  ;;  %410 = vmatprep.subr.bf16.mxu1 %v792_v31 }
  0x2d   :  { %369 = vmatprep.subr.bf16.mxu0 %v753_v24 }
  0x2f   :  { %411 = vmatpush1.bf16.msra.mxu1 %v796_v35 }
  0x30   :  { %370 = vmatpush1.bf16.msra.mxu0 %v755_v25  ;;  %412 = vmatprep.subr.bf16.mxu1 %v798_v36 }
  0x31   :  { %371 = vmatprep.subr.bf16.mxu0 %v758_v28 }
  0x33   :  { %413 = vmatpush1.bf16.msra.mxu1 %v802_v39 }
  0x34   :  { %372 = vmatpush1.bf16.msra.mxu0 %v761_v30  ;;  %698 = vmatprep.subr.bf16.mxu1 %v808_v40 }
  0x35   :  { %373 = vmatprep.subr.bf16.mxu0 %v764_v32 }
  0x36   :  { %431 = vmatmul.mubr.bf16.vlgmr.msra.gmra.mrb[0].mxu1 %v807_v43 }
  0x37   :  { %699 = vmatpush3.bf16.msra.mxu1 %v809_v45 }
  0x38   :  { %374 = vmatpush1.bf16.msra.mxu0 %v767_v33  ;;  %700 = vmatprep.subr.bf16.mxu1 %v810_v46 }
  0x39   :  { %375 = vmatprep.subr.bf16.mxu0 %v770_v37 }
  0x3b   :  { %701 = vmatpush3.bf16.msra.mxu1 %v811_v47 }
  0x3c   :  { %376 = vmatpush1.bf16.msra.mxu0 %v773_v38  ;;  %702 = vmatprep.subr.bf16.mxu1 %v812_v49 }
  0x3d   :  { %377 = vmatprep.subr.bf16.mxu0 %v776_v41 }
  0x3f   :  { %703 = vmatpush3.bf16.msra.mxu1 %v813_v51 }
  0x40   :  { %378 = vmatpush1.bf16.msra.mxu0 %v779_v42  ;;  %704 = vmatprep.subr.bf16.mxu1 %v814_v53 }
  0x41   :  { %379 = vmatprep.subr.bf16.mxu0 %v782_v44 }
  0x43   :  { %705 = vmatpush3.bf16.msra.mxu1 %v815_v55 }
  0x44   :  { %380 = vmatpush1.bf16.msra.mxu0 %v785_v48  ;;  %706 = vmatprep.subr.bf16.mxu1 %v816_v57 }
  0x45   :  { %381 = vmatprep.subr.bf16.mxu0 %v788_v50 }
  0x47   :  { %707 = vmatpush3.bf16.msra.mxu1 %v817_v59 }
  0x48   :  { %382 = vmatpush1.bf16.msra.mxu0 %v791_v52  ;;  %708 = vmatprep.subr.bf16.mxu1 %v818_v62 }
  0x49   :  { %383 = vmatprep.subr.bf16.mxu0 %v794_v54 }
  0x4b   :  { %709 = vmatpush3.bf16.msra.mxu1 %v819_v63 }
  0x4c   :  { %384 = vmatpush1.bf16.msra.mxu0 %v797_v56  ;;  %710 = vmatprep.subr.bf16.mxu1 %v820_v0 }
  0x4d   :  { %385 = vmatprep.subr.bf16.mxu0 %v800_v58 }
  0x4f   :  { %711 = vmatpush3.bf16.msra.mxu1 %v821_v1 }
  0x50   :  { %386 = vmatpush1.bf16.msra.mxu0 %v803_v60  ;;  %712 = vmatprep.subr.bf16.mxu1 %v822_v2 }
  0x53   :  { %388 = vmatmul.mubr.bf16.vlgmr.msra.gmra.mrb[0].mxu0 %v804_v61  ;;  %713 = vmatpush3.bf16.msra.mxu1 %v823_v3 }
 0x109   :  { %v432_v4 = vpop.f32.mrb[0].mxu1 }
 0x10a   :  { %v434_v5 = vpop.f32.mrb[1].mxu1 }
 0x10b   :  { %v436_v6 = vpop.f32.mrb[2].mxu1 }
 0x10c   :  { %v438_v7 = vpop.f32.mrb[3].mxu1 }
 0x126   :  { %v389_v15 = vpop.f32.mrb[0].mxu0 }
 0x127   :  { %v390_v16 = vadd.f32 %v389_v15, %v92_v13  ;;  %v391_v17 = vpop.f32.mrb[1].mxu0 }
 0x128   :  { %v392_v18 = vadd.f32 %v391_v17, %v96_v14  ;;  %v393_v19 = vpop.f32.mrb[2].mxu0 }
 0x129   :  { %v433_v20 = vadd.f32 %v432_v4, %v390_v16  ;;  %v394_v21 = vadd.f32 %v393_v19, %v92_v13  ;;  %v395_v22 = vpop.f32.mrb[3].mxu0 }
 0x12a   :  { %v435_v23 = vadd.f32 %v434_v5, %v392_v18  ;;  %v396_v24 = vadd.f32 %v395_v22, %v96_v14 }
 0x12b   :  { %v437_v25 = vadd.f32 %v436_v6, %v394_v21  ;;  %v441_v27 = vmax.f32 %v433_v20, 0.0 }
 0x12c   :  { %v439_v26 = vadd.f32 %v438_v7, %v396_v24  ;;  %v442_v29 = vmax.f32 %v435_v23, 0.0 }
 0x12d   :  { %v443_v28 = vmax.f32 %v437_v25, 0.0 }
 0x12e   :  { %v444_v30 = vmax.f32 %v439_v26, 0.0 }
 0x12f   :  { %v445_v31 = vpack.c.bf16 %v443_v28, %v441_v27 }
 0x130   :  { %v446_v32 = vpack.c.bf16 %v444_v30, %v442_v29 }
 0x132   :  { %614 = vmatprep.mubr.bf16.mxu1 %v446_v32 }
 0x133   :  { %615 = vmatmul.mubr.bf16.vlgmr.msra.gmra.mrb[4].mxu1 %v445_v31 }
 0x206   :  { %v714_v33 = vpop.f32.mrb[4].mxu1 }
 0x207   :  { %v715_v35 = vpop.f32.mrb[5].mxu1 }
 0x208   :  { %v716_v36 = vadd.f32 %v715_v35, %v714_v33  ;;  %v717_v37 = vpop.f32.mrb[6].mxu1 }
 0x209   :  { %v718_v38 = vpop.f32.mrb[7].mxu1 }
 0x20a   :  { %v617_v39 = vadd.f32 %v716_v36, %v681_v34  ;;  %v719_v40 = vadd.f32 %v718_v38, %v717_v37 }
 0x20c   :  { %623 = vst [vmem:[%s968_s5] sm:$0xff] %v617_v39  ;;  %v620_v41 = vadd.f32 %v719_v40, %v681_v34 }
 0x20e   :  { %624 = vst [vmem:[%s968_s5 + $0x8] sm:$0xff] %v620_v41 }
 0x20f   :  { %629 = vsyncpa [#allocation3], 1 }

</bundles_post_ra>
